<compile_context>
chip_gen: v5e
topology: v5e:2x2
jax: 0.10.0
libtpu: 0.0.40
codegen_flags: <defaults>
</compile_context>

<pallas_src>
import jax
import jax.numpy as jnp
from jax import lax
from jax.experimental import pallas as pl
from jax.experimental.pallas import tpu as pltpu


def _sigmoid(x):
    # exp goes to the EUP; the divide is expressed as an (exact) reciprocal so it also
    # stays off the VALU slot during the elementwise gate phase.
    return pl.reciprocal(1.0 + jnp.exp(-x), approx=False)


def lstm_cls_kernel(emb_ref,       # [T_blk, B, E]  f32 — current time block
                    wih_f_ref,     # [E, 4H] fused fwd input weights  (i,f,g,o)
                    whh_f_ref,     # [H, 4H] fused fwd hidden weights
                    b_f_ref,       # [1, 4H] fused fwd bias (b_ih + b_hh)
                    wih_b_ref,     # [E, 4H] fused reverse-direction input weights
                    b_b_ref,       # [1, 4H] fused reverse-direction bias
                    wmlp_f_ref,    # [H, 1]
                    wmlp_b_ref,    # [H, 1]
                    bmlp_ref,      # [1, 1]  (SMEM scalar)
                    out_ref,       # [B, 1]
                    h_ref,         # [B, H]  VMEM scratch, carried across time blocks
                    c_ref,         # [B, H]  VMEM scratch, carried across time blocks
                    xproj_ref):    # [T_blk, B, 4H] VMEM scratch (hoisted input proj)
    t_blk, B, E = emb_ref.shape
    H4 = whh_f_ref.shape[-1]
    H = H4 // 4
    t = pl.program_id(1)

    @pl.when(t == 0)
    def _init():
        h_ref[...] = jnp.zeros_like(h_ref)
        c_ref[...] = jnp.zeros_like(c_ref)

    # Hoisted input projection for the whole time block: one lane-dense MXU matmul.
    x_flat = emb_ref[...].reshape(t_blk * B, E)
    xproj_ref[...] = (
        jnp.dot(x_flat, wih_f_ref[...], preferred_element_type=jnp.float32)
        + b_f_ref[...]
    ).reshape(t_blk, B, H4)

    # Only loop-invariant weight kept live across the recurrence.
    whh_f = whh_f_ref[...]

    def step(i, carry):
        h, c = carry
        gates = xproj_ref[i] + jnp.dot(h, whh_f, preferred_element_type=jnp.float32)
        i_g = _sigmoid(gates[:, 0 * H:1 * H])
        f_g = _sigmoid(gates[:, 1 * H:2 * H])
        g_g = jnp.tanh(gates[:, 2 * H:3 * H])
        o_g = _sigmoid(gates[:, 3 * H:4 * H])
        c_new = f_g * c + i_g * g_g
        h_new = o_g * jnp.tanh(c_new)
        return h_new, c_new

    # Fully unrolled: gives the LLO scheduler visibility to overlap one step's MXU
    # result drain with the previous step's gate math.
    h, c = lax.fori_loop(0, t_blk, step, (h_ref[...], c_ref[...]), unroll=True)
    h_ref[...] = h
    c_ref[...] = c

    @pl.when(t == pl.num_programs(1) - 1)
    def _finalize():
        # Reverse direction: output[:, -1, H:] == one cell step on x[T-1] from the zero
        # state, so the h0 @ W_hh_b term vanishes and f_b * c0 == 0.
        x_last = emb_ref[t_blk - 1]                               # [B, E]
        gates_b = (jnp.dot(x_last, wih_b_ref[...],
                           preferred_element_type=jnp.float32) + b_b_ref[...])
        i_b = _sigmoid(gates_b[:, 0 * H:1 * H])
        g_b = jnp.tanh(gates_b[:, 2 * H:3 * H])
        o_b = _sigmoid(gates_b[:, 3 * H:4 * H])
        h_bwd = o_b * jnp.tanh(i_b * g_b)

        # Linear(2H -> 1) split over the two direction halves, then sigmoid.
        logits = (jnp.dot(h, wmlp_f_ref[...], preferred_element_type=jnp.float32)
                  + jnp.dot(h_bwd, wmlp_b_ref[...], preferred_element_type=jnp.float32)
                  + bmlp_ref[0, 0])
        out_ref[...] = _sigmoid(logits)


def init_params(key, vocab_size, embedding_dim, hidden_dim):
    """Deterministic parameter init mimicking PyTorch default inits."""
    keys = jax.random.split(key, 12)
    E, H = embedding_dim, hidden_dim
    k_lstm = 1.0 / jnp.sqrt(H)
    k_mlp = 1.0 / jnp.sqrt(2 * H)

    def unif(k, shape, lim):
        return jax.random.uniform(k, shape, jnp.float32, -lim, lim)

    params = {
        "embedding": jax.random.normal(keys[0], (vocab_size, E), jnp.float32),
        # forward direction (PyTorch layout [4H, E] / [4H, H] / [4H], gate order i,f,g,o)
        "w_ih_f": unif(keys[1], (4 * H, E), k_lstm),
        "w_hh_f": unif(keys[2], (4 * H, H), k_lstm),
        "b_ih_f": unif(keys[3], (4 * H,), k_lstm),
        "b_hh_f": unif(keys[4], (4 * H,), k_lstm),
        # reverse direction
        "w_ih_b": unif(keys[5], (4 * H, E), k_lstm),
        "w_hh_b": unif(keys[6], (4 * H, H), k_lstm),
        "b_ih_b": unif(keys[7], (4 * H,), k_lstm),
        "b_hh_b": unif(keys[8], (4 * H,), k_lstm),
        # mlp: Linear(2H, 1)
        "w_mlp": unif(keys[9], (1, 2 * H), k_mlp),
        "b_mlp": unif(keys[10], (1,), k_mlp),
    }
    return params


def _fuse_gates(w_ih, w_hh, b_ih, b_hh):
    """PyTorch [4H,*] layout -> fused kernel layout [*, 4H] (gate order i,f,g,o)."""
    wih = jnp.transpose(w_ih).astype(jnp.float32)            # [E, 4H]
    whh = jnp.transpose(w_hh).astype(jnp.float32)            # [H, 4H]
    b = (b_ih + b_hh).reshape(1, -1).astype(jnp.float32)     # [1, 4H]
    return wih, whh, b


def _pick_time_block(T, max_blk=16):
    for cand in range(min(T, max_blk), 0, -1):
        if T % cand == 0:
            return cand
    return 1


def lstm_classification_forward(token_ids, params, hidden_dim, *, t_block=None, b_tile=8):
    """token_ids: int32 [B, T]. Returns float32 [B] of probabilities."""
    emb_table = params["embedding"]
    B, T = token_ids.shape
    E = emb_table.shape[1]
    H = hidden_dim
    H4 = 4 * H

    if t_block is None:
        t_block = _pick_time_block(T)
    assert T % t_block == 0, "t_block must divide T"

    # Embedding lookup (gather) is plain-JAX glue; produce the time-major [T, B, E]
    # layout directly from the gather so the activation tensor is never relaid out.
    emb = jnp.take(emb_table, token_ids.T, axis=0).astype(jnp.float32)   # [T, B, E]

    # Pad batch to a sublane multiple so all kernel loads/stores are unmasked.
    B_pad = ((B + b_tile - 1) // b_tile) * b_tile
    if B_pad != B:
        emb = jnp.pad(emb, ((0, 0), (0, B_pad - B), (0, 0)))

    wih_f, whh_f, b_f = _fuse_gates(params["w_ih_f"], params["w_hh_f"],
                                    params["b_ih_f"], params["b_hh_f"])
    # Reverse direction only needs its input weights + fused bias (h0 == 0, c0 == 0).
    wih_b, _, b_b = _fuse_gates(params["w_ih_b"], params["w_hh_b"],
                                params["b_ih_b"], params["b_hh_b"])
    wmlp_f = params["w_mlp"][:, :H].T.astype(jnp.float32)      # [H, 1]
    wmlp_b = params["w_mlp"][:, H:].T.astype(jnp.float32)      # [H, 1]
    bmlp = params["b_mlp"].reshape(1, 1).astype(jnp.float32)   # [1, 1] -> SMEM scalar

    grid = (B_pad // b_tile, T // t_block)
    const2 = lambda b, t: (0, 0)

    grid_spec = pltpu.PrefetchScalarGridSpec(
        num_scalar_prefetch=0,
        grid=grid,
        in_specs=[
            pl.BlockSpec((t_block, b_tile, E), lambda b, t: (t, b, 0)),   # emb (streamed)
            pl.BlockSpec((E, H4), const2),                                # wih_f
            pl.BlockSpec((H, H4), const2),                                # whh_f
            pl.BlockSpec((1, H4), const2),                                # b_f
            pl.BlockSpec((E, H4), const2),                                # wih_b
            pl.BlockSpec((1, H4), const2),                                # b_b
            pl.BlockSpec((H, 1), const2),                                 # wmlp_f
            pl.BlockSpec((H, 1), const2),                                 # wmlp_b
            pl.BlockSpec((1, 1), const2,
                         memory_space=pltpu.MemorySpace.SMEM),            # bmlp scalar
        ],
        out_specs=pl.BlockSpec((b_tile, 1), lambda b, t: (b, 0)),
        scratch_shapes=[
            pltpu.VMEM((b_tile, H), jnp.float32),               # h carry
            pltpu.VMEM((b_tile, H), jnp.float32),               # c carry
            pltpu.VMEM((t_block, b_tile, H4), jnp.float32),     # hoisted input projection
        ],
    )

    out = pl.pallas_call(
        lstm_cls_kernel,
        out_shape=jax.ShapeDtypeStruct((B_pad, 1), jnp.float32),
        grid_spec=grid_spec,
        compiler_params=pltpu.CompilerParams(
            dimension_semantics=("parallel", "arbitrary")),
    )(emb, wih_f, whh_f, b_f, wih_b, b_b, wmlp_f, wmlp_b, bmlp)

    return out.reshape(-1)[:B]                                  # matches .view(-1)


def reference_forward(token_ids, params, hidden_dim):
    """Pure-JAX reference: full bidirectional LSTM, exactly PyTorch semantics."""
    H = hidden_dim
    emb = jnp.take(params["embedding"], token_ids, axis=0)      # [B, T, E]
    B, T, _ = emb.shape

    def run_dir(x_seq, w_ih, w_hh, b_ih, b_hh):
        def step(carry, x_t):
            h, c = carry
            gates = x_t @ w_ih.T + h @ w_hh.T + b_ih + b_hh
            i, f, g, o = jnp.split(gates, 4, axis=-1)
            i, f, o = jax.nn.sigmoid(i), jax.nn.sigmoid(f), jax.nn.sigmoid(o)
            g = jnp.tanh(g)
            c = f * c + i * g
            h = o * jnp.tanh(c)
            return (h, c), h
        h0 = jnp.zeros((B, H), jnp.float32)
        _, hs = lax.scan(step, (h0, h0), jnp.transpose(x_seq, (1, 0, 2)))
        return jnp.transpose(hs, (1, 0, 2))                     # [B, T, H]

    out_f = run_dir(emb, params["w_ih_f"], params["w_hh_f"],
                    params["b_ih_f"], params["b_hh_f"])
    out_b = run_dir(emb[:, ::-1, :], params["w_ih_b"], params["w_hh_b"],
                    params["b_ih_b"], params["b_hh_b"])[:, ::-1, :]
    output = jnp.concatenate([out_f, out_b], axis=-1)           # [B, T, 2H]
    last = output[:, -1, :]
    logits = last @ params["w_mlp"].T + params["b_mlp"]
    return jax.nn.sigmoid(logits).reshape(-1)


if __name__ == "__main__":
    VOCAB, E, H = 50, 32, 32
    B, T = 2, 8

    key = jax.random.PRNGKey(0)
    pkey, xkey = jax.random.split(key)
    params = init_params(pkey, VOCAB, E, H)
    token_ids = jax.random.randint(xkey, (B, T), 0, VOCAB, dtype=jnp.int32)

    # t_block=4 -> grid = (1 batch block, 2 time blocks): exercises the carried h/c state.
    out = lstm_classification_forward(token_ids, params, H, t_block=4)
    out = jax.block_until_ready(out)

    ref = reference_forward(token_ids, params, H)
    assert out.shape == (B,)
    assert jnp.allclose(out, ref, rtol=1e-5, atol=1e-5), (out, ref)

    print("KERNEL_OK")
</pallas_src>

<mosaic_0001>
module attributes {stable_mosaic.version = 11 : i64} {
  func.func @lstm_cls_kernel(%arg0: i32, %arg1: i32, %arg2: memref<4x8x32xf32, #tpu.memory_space<vmem>>, %arg3: memref<32x128xf32, #tpu.memory_space<vmem>>, %arg4: memref<32x128xf32, #tpu.memory_space<vmem>>, %arg5: memref<1x128xf32, #tpu.memory_space<vmem>>, %arg6: memref<32x128xf32, #tpu.memory_space<vmem>>, %arg7: memref<1x128xf32, #tpu.memory_space<vmem>>, %arg8: memref<32x1xf32, #tpu.memory_space<vmem>>, %arg9: memref<32x1xf32, #tpu.memory_space<vmem>>, %arg10: memref<1x1xf32, #tpu.memory_space<smem>>, %arg11: memref<8x1xf32, #tpu.memory_space<vmem>>, %arg12: memref<8x32xf32, #tpu.memory_space<vmem>>, %arg13: memref<8x32xf32, #tpu.memory_space<vmem>>, %arg14: memref<4x8x128xf32, #tpu.memory_space<vmem>>) attributes {dimension_semantics = [#tpu.dimension_semantics<parallel>, #tpu.dimension_semantics<arbitrary>], iteration_bounds = array<i64: 1, 2>, scalar_prefetch = 0 : i64, scratch_operands = 3 : i64, tpu.core_type = #tpu.core_type<tc>, window_params = [{transform_indices = @transform_0, window_bounds = array<i64: 4, 8, 32>}, {pipeline_mode = #tpu.pipeline_mode<synchronous>, transform_indices = @transform_1, window_bounds = array<i64: 32, 128>}, {pipeline_mode = #tpu.pipeline_mode<synchronous>, transform_indices = @transform_2, window_bounds = array<i64: 32, 128>}, {pipeline_mode = #tpu.pipeline_mode<synchronous>, transform_indices = @transform_3, window_bounds = array<i64: 1, 128>}, {pipeline_mode = #tpu.pipeline_mode<synchronous>, transform_indices = @transform_4, window_bounds = array<i64: 32, 128>}, {pipeline_mode = #tpu.pipeline_mode<synchronous>, transform_indices = @transform_5, window_bounds = array<i64: 1, 128>}, {pipeline_mode = #tpu.pipeline_mode<synchronous>, transform_indices = @transform_6, window_bounds = array<i64: 32, 1>}, {pipeline_mode = #tpu.pipeline_mode<synchronous>, transform_indices = @transform_7, window_bounds = array<i64: 32, 1>}, {transform_indices = @transform_8, window_bounds = array<i64: 1, 1>}, {transform_indices = @transform_9, window_bounds = array<i64: 8, 1>}]} {
    %c0_i32 = arith.constant 0 : i32
    %0 = arith.cmpi eq, %arg1, %c0_i32 : i32
    %1 = arith.extui %0 : i1 to i32
    %c0_i32_0 = arith.constant 0 : i32
    %2 = arith.cmpi ne, %1, %c0_i32_0 : i32
    scf.if %2 {
      %cst_59 = arith.constant 0.000000e+00 : f32
      %152 = vector.broadcast %cst_59 : f32 to vector<8x32xf32>
      %c0_60 = arith.constant 0 : index
      %c0_61 = arith.constant 0 : index
      %153 = vector.load %arg12[%c0_60, %c0_61] : memref<8x32xf32, #tpu.memory_space<vmem>>, vector<8x32xf32>
      tpu.vector_store %arg12[%c0_60, %c0_61], %152 {strides = array<i32>} : memref<8x32xf32, #tpu.memory_space<vmem>>, vector<8x32xf32>,
      %cst_62 = arith.constant 0.000000e+00 : f32
      %154 = vector.broadcast %cst_62 : f32 to vector<8x32xf32>
      %c0_63 = arith.constant 0 : index
      %c0_64 = arith.constant 0 : index
      %155 = vector.load %arg13[%c0_63, %c0_64] : memref<8x32xf32, #tpu.memory_space<vmem>>, vector<8x32xf32>
      tpu.vector_store %arg13[%c0_63, %c0_64], %154 {strides = array<i32>} : memref<8x32xf32, #tpu.memory_space<vmem>>, vector<8x32xf32>,
    } else {
    }
    %c0 = arith.constant 0 : index
    %c0_1 = arith.constant 0 : index
    %c0_2 = arith.constant 0 : index
    %3 = vector.load %arg2[%c0, %c0_1, %c0_2] : memref<4x8x32xf32, #tpu.memory_space<vmem>>, vector<4x8x32xf32>
    %4 = vector.shape_cast %3 : vector<4x8x32xf32> to vector<32x32xf32>
    %c0_3 = arith.constant 0 : index
    %c0_4 = arith.constant 0 : index
    %5 = vector.load %arg3[%c0_3, %c0_4] : memref<32x128xf32, #tpu.memory_space<vmem>>, vector<32x128xf32>
    %cst = arith.constant dense<0.000000e+00> : vector<32x128xf32>
    %6 = tpu.matmul %4, %5, %cst {dimension_numbers = #tpu.dot_dimension_numbers<[1], [0], [0], [1], [0, 0, 1, 1], [], []>} : vector<32x32xf32>, vector<32x128xf32>, vector<32x128xf32> -> vector<32x128xf32>
    %c0_5 = arith.constant 0 : index
    %c0_6 = arith.constant 0 : index
    %7 = vector.load %arg5[%c0_5, %c0_6] : memref<1x128xf32, #tpu.memory_space<vmem>>, vector<1x128xf32>
    %8 = vector.broadcast %7 : vector<1x128xf32> to vector<32x128xf32>
    %9 = arith.addf %6, %8 : vector<32x128xf32>
    %10 = vector.shape_cast %9 : vector<32x128xf32> to vector<4x8x128xf32>
    %c0_7 = arith.constant 0 : index
    %c0_8 = arith.constant 0 : index
    %c0_9 = arith.constant 0 : index
    %11 = vector.load %arg14[%c0_7, %c0_8, %c0_9] : memref<4x8x128xf32, #tpu.memory_space<vmem>>, vector<4x8x128xf32>
    tpu.vector_store %arg14[%c0_7, %c0_8, %c0_9], %10 {strides = array<i32>} : memref<4x8x128xf32, #tpu.memory_space<vmem>>, vector<4x8x128xf32>,
    %c0_10 = arith.constant 0 : index
    %c0_11 = arith.constant 0 : index
    %12 = vector.load %arg4[%c0_10, %c0_11] : memref<32x128xf32, #tpu.memory_space<vmem>>, vector<32x128xf32>
    %c0_12 = arith.constant 0 : index
    %c0_13 = arith.constant 0 : index
    %13 = vector.load %arg12[%c0_12, %c0_13] : memref<8x32xf32, #tpu.memory_space<vmem>>, vector<8x32xf32>
    %c0_14 = arith.constant 0 : index
    %c0_15 = arith.constant 0 : index
    %14 = vector.load %arg13[%c0_14, %c0_15] : memref<8x32xf32, #tpu.memory_space<vmem>>, vector<8x32xf32>
    %c0_i32_16 = arith.constant 0 : i32
    %15 = arith.index_cast %c0_i32_16 : i32 to index
    %c0_17 = arith.constant 0 : index
    %c0_18 = arith.constant 0 : index
    %16 = vector.load %arg14[%15, %c0_17, %c0_18] : memref<4x8x128xf32, #tpu.memory_space<vmem>>, vector<1x8x128xf32>
    %17 = vector.shape_cast %16 : vector<1x8x128xf32> to vector<8x128xf32>
    %cst_19 = arith.constant dense<0.000000e+00> : vector<8x128xf32>
    %18 = tpu.matmul %13, %12, %cst_19 {dimension_numbers = #tpu.dot_dimension_numbers<[1], [0], [0], [1], [0, 0, 1, 1], [], []>} : vector<8x32xf32>, vector<32x128xf32>, vector<8x128xf32> -> vector<8x128xf32>
    %19 = arith.addf %17, %18 : vector<8x128xf32>
    %20 = vector.extract_strided_slice %19 {offsets = [0, 0], sizes = [8, 32], strides = [1, 1]} : vector<8x128xf32> to vector<8x32xf32>
    %cst_20 = arith.constant 0.000000e+00 : f32
    %21 = vector.broadcast %cst_20 : f32 to vector<8x32xf32>
    %22 = arith.subf %21, %20 : vector<8x32xf32>
    %23 = math.exp %22 : vector<8x32xf32>
    %cst_21 = arith.constant 1.000000e+00 : f32
    %24 = vector.broadcast %cst_21 : f32 to vector<8x32xf32>
    %25 = arith.addf %24, %23 : vector<8x32xf32>
    %26 = tpu.reciprocal %25 : vector<8x32xf32> -> vector<8x32xf32>
    %27 = vector.extract_strided_slice %19 {offsets = [0, 32], sizes = [8, 32], strides = [1, 1]} : vector<8x128xf32> to vector<8x32xf32>
    %cst_22 = arith.constant 0.000000e+00 : f32
    %28 = vector.broadcast %cst_22 : f32 to vector<8x32xf32>
    %29 = arith.subf %28, %27 : vector<8x32xf32>
    %30 = math.exp %29 : vector<8x32xf32>
    %cst_23 = arith.constant 1.000000e+00 : f32
    %31 = vector.broadcast %cst_23 : f32 to vector<8x32xf32>
    %32 = arith.addf %31, %30 : vector<8x32xf32>
    %33 = tpu.reciprocal %32 : vector<8x32xf32> -> vector<8x32xf32>
    %34 = vector.extract_strided_slice %19 {offsets = [0, 64], sizes = [8, 32], strides = [1, 1]} : vector<8x128xf32> to vector<8x32xf32>
    %35 = math.tanh %34 : vector<8x32xf32>
    %36 = vector.extract_strided_slice %19 {offsets = [0, 96], sizes = [8, 32], strides = [1, 1]} : vector<8x128xf32> to vector<8x32xf32>
    %cst_24 = arith.constant 0.000000e+00 : f32
    %37 = vector.broadcast %cst_24 : f32 to vector<8x32xf32>
    %38 = arith.subf %37, %36 : vector<8x32xf32>
    %39 = math.exp %38 : vector<8x32xf32>
    %cst_25 = arith.constant 1.000000e+00 : f32
    %40 = vector.broadcast %cst_25 : f32 to vector<8x32xf32>
    %41 = arith.addf %40, %39 : vector<8x32xf32>
    %42 = tpu.reciprocal %41 : vector<8x32xf32> -> vector<8x32xf32>
    %43 = arith.mulf %33, %14 : vector<8x32xf32>
    %44 = arith.mulf %26, %35 : vector<8x32xf32>
    %45 = arith.addf %43, %44 : vector<8x32xf32>
    %46 = math.tanh %45 : vector<8x32xf32>
    %47 = arith.mulf %42, %46 : vector<8x32xf32>
    %c1_i32 = arith.constant 1 : i32
    %48 = arith.index_cast %c1_i32 : i32 to index
    %c0_26 = arith.constant 0 : index
    %c0_27 = arith.constant 0 : index
    %49 = vector.load %arg14[%48, %c0_26, %c0_27] : memref<4x8x128xf32, #tpu.memory_space<vmem>>, vector<1x8x128xf32>
    %50 = vector.shape_cast %49 : vector<1x8x128xf32> to vector<8x128xf32>
    %cst_28 = arith.constant dense<0.000000e+00> : vector<8x128xf32>
    %51 = tpu.matmul %47, %12, %cst_28 {dimension_numbers = #tpu.dot_dimension_numbers<[1], [0], [0], [1], [0, 0, 1, 1], [], []>} : vector<8x32xf32>, vector<32x128xf32>, vector<8x128xf32> -> vector<8x128xf32>
    %52 = arith.addf %50, %51 : vector<8x128xf32>
    %53 = vector.extract_strided_slice %52 {offsets = [0, 0], sizes = [8, 32], strides = [1, 1]} : vector<8x128xf32> to vector<8x32xf32>
    %cst_29 = arith.constant 0.000000e+00 : f32
    %54 = vector.broadcast %cst_29 : f32 to vector<8x32xf32>
    %55 = arith.subf %54, %53 : vector<8x32xf32>
    %56 = math.exp %55 : vector<8x32xf32>
    %cst_30 = arith.constant 1.000000e+00 : f32
    %57 = vector.broadcast %cst_30 : f32 to vector<8x32xf32>
    %58 = arith.addf %57, %56 : vector<8x32xf32>
    %59 = tpu.reciprocal %58 : vector<8x32xf32> -> vector<8x32xf32>
    %60 = vector.extract_strided_slice %52 {offsets = [0, 32], sizes = [8, 32], strides = [1, 1]} : vector<8x128xf32> to vector<8x32xf32>
    %cst_31 = arith.constant 0.000000e+00 : f32
    %61 = vector.broadcast %cst_31 : f32 to vector<8x32xf32>
    %62 = arith.subf %61, %60 : vector<8x32xf32>
    %63 = math.exp %62 : vector<8x32xf32>
    %cst_32 = arith.constant 1.000000e+00 : f32
    %64 = vector.broadcast %cst_32 : f32 to vector<8x32xf32>
    %65 = arith.addf %64, %63 : vector<8x32xf32>
    %66 = tpu.reciprocal %65 : vector<8x32xf32> -> vector<8x32xf32>
    %67 = vector.extract_strided_slice %52 {offsets = [0, 64], sizes = [8, 32], strides = [1, 1]} : vector<8x128xf32> to vector<8x32xf32>
    %68 = math.tanh %67 : vector<8x32xf32>
    %69 = vector.extract_strided_slice %52 {offsets = [0, 96], sizes = [8, 32], strides = [1, 1]} : vector<8x128xf32> to vector<8x32xf32>
    %cst_33 = arith.constant 0.000000e+00 : f32
    %70 = vector.broadcast %cst_33 : f32 to vector<8x32xf32>
    %71 = arith.subf %70, %69 : vector<8x32xf32>
    %72 = math.exp %71 : vector<8x32xf32>
    %cst_34 = arith.constant 1.000000e+00 : f32
    %73 = vector.broadcast %cst_34 : f32 to vector<8x32xf32>
    %74 = arith.addf %73, %72 : vector<8x32xf32>
    %75 = tpu.reciprocal %74 : vector<8x32xf32> -> vector<8x32xf32>
    %76 = arith.mulf %66, %45 : vector<8x32xf32>
    %77 = arith.mulf %59, %68 : vector<8x32xf32>
    %78 = arith.addf %76, %77 : vector<8x32xf32>
    %79 = math.tanh %78 : vector<8x32xf32>
    %80 = arith.mulf %75, %79 : vector<8x32xf32>
    %c2_i32 = arith.constant 2 : i32
    %81 = arith.index_cast %c2_i32 : i32 to index
    %c0_35 = arith.constant 0 : index
    %c0_36 = arith.constant 0 : index
    %82 = vector.load %arg14[%81, %c0_35, %c0_36] : memref<4x8x128xf32, #tpu.memory_space<vmem>>, vector<1x8x128xf32>
    %83 = vector.shape_cast %82 : vector<1x8x128xf32> to vector<8x128xf32>
    %cst_37 = arith.constant dense<0.000000e+00> : vector<8x128xf32>
    %84 = tpu.matmul %80, %12, %cst_37 {dimension_numbers = #tpu.dot_dimension_numbers<[1], [0], [0], [1], [0, 0, 1, 1], [], []>} : vector<8x32xf32>, vector<32x128xf32>, vector<8x128xf32> -> vector<8x128xf32>
    %85 = arith.addf %83, %84 : vector<8x128xf32>
    %86 = vector.extract_strided_slice %85 {offsets = [0, 0], sizes = [8, 32], strides = [1, 1]} : vector<8x128xf32> to vector<8x32xf32>
    %cst_38 = arith.constant 0.000000e+00 : f32
    %87 = vector.broadcast %cst_38 : f32 to vector<8x32xf32>
    %88 = arith.subf %87, %86 : vector<8x32xf32>
    %89 = math.exp %88 : vector<8x32xf32>
    %cst_39 = arith.constant 1.000000e+00 : f32
    %90 = vector.broadcast %cst_39 : f32 to vector<8x32xf32>
    %91 = arith.addf %90, %89 : vector<8x32xf32>
    %92 = tpu.reciprocal %91 : vector<8x32xf32> -> vector<8x32xf32>
    %93 = vector.extract_strided_slice %85 {offsets = [0, 32], sizes = [8, 32], strides = [1, 1]} : vector<8x128xf32> to vector<8x32xf32>
    %cst_40 = arith.constant 0.000000e+00 : f32
    %94 = vector.broadcast %cst_40 : f32 to vector<8x32xf32>
    %95 = arith.subf %94, %93 : vector<8x32xf32>
    %96 = math.exp %95 : vector<8x32xf32>
    %cst_41 = arith.constant 1.000000e+00 : f32
    %97 = vector.broadcast %cst_41 : f32 to vector<8x32xf32>
    %98 = arith.addf %97, %96 : vector<8x32xf32>
    %99 = tpu.reciprocal %98 : vector<8x32xf32> -> vector<8x32xf32>
    %100 = vector.extract_strided_slice %85 {offsets = [0, 64], sizes = [8, 32], strides = [1, 1]} : vector<8x128xf32> to vector<8x32xf32>
    %101 = math.tanh %100 : vector<8x32xf32>
    %102 = vector.extract_strided_slice %85 {offsets = [0, 96], sizes = [8, 32], strides = [1, 1]} : vector<8x128xf32> to vector<8x32xf32>
    %cst_42 = arith.constant 0.000000e+00 : f32
    %103 = vector.broadcast %cst_42 : f32 to vector<8x32xf32>
    %104 = arith.subf %103, %102 : vector<8x32xf32>
    %105 = math.exp %104 : vector<8x32xf32>
    %cst_43 = arith.constant 1.000000e+00 : f32
    %106 = vector.broadcast %cst_43 : f32 to vector<8x32xf32>
    %107 = arith.addf %106, %105 : vector<8x32xf32>
    %108 = tpu.reciprocal %107 : vector<8x32xf32> -> vector<8x32xf32>
    %109 = arith.mulf %99, %78 : vector<8x32xf32>
    %110 = arith.mulf %92, %101 : vector<8x32xf32>
    %111 = arith.addf %109, %110 : vector<8x32xf32>
    %112 = math.tanh %111 : vector<8x32xf32>
    %113 = arith.mulf %108, %112 : vector<8x32xf32>
    %c3_i32 = arith.constant 3 : i32
    %114 = arith.index_cast %c3_i32 : i32 to index
    %c0_44 = arith.constant 0 : index
    %c0_45 = arith.constant 0 : index
    %115 = vector.load %arg14[%114, %c0_44, %c0_45] : memref<4x8x128xf32, #tpu.memory_space<vmem>>, vector<1x8x128xf32>
    %116 = vector.shape_cast %115 : vector<1x8x128xf32> to vector<8x128xf32>
    %cst_46 = arith.constant dense<0.000000e+00> : vector<8x128xf32>
    %117 = tpu.matmul %113, %12, %cst_46 {dimension_numbers = #tpu.dot_dimension_numbers<[1], [0], [0], [1], [0, 0, 1, 1], [], []>} : vector<8x32xf32>, vector<32x128xf32>, vector<8x128xf32> -> vector<8x128xf32>
    %118 = arith.addf %116, %117 : vector<8x128xf32>
    %119 = vector.extract_strided_slice %118 {offsets = [0, 0], sizes = [8, 32], strides = [1, 1]} : vector<8x128xf32> to vector<8x32xf32>
    %cst_47 = arith.constant 0.000000e+00 : f32
    %120 = vector.broadcast %cst_47 : f32 to vector<8x32xf32>
    %121 = arith.subf %120, %119 : vector<8x32xf32>
    %122 = math.exp %121 : vector<8x32xf32>
    %cst_48 = arith.constant 1.000000e+00 : f32
    %123 = vector.broadcast %cst_48 : f32 to vector<8x32xf32>
    %124 = arith.addf %123, %122 : vector<8x32xf32>
    %125 = tpu.reciprocal %124 : vector<8x32xf32> -> vector<8x32xf32>
    %126 = vector.extract_strided_slice %118 {offsets = [0, 32], sizes = [8, 32], strides = [1, 1]} : vector<8x128xf32> to vector<8x32xf32>
    %cst_49 = arith.constant 0.000000e+00 : f32
    %127 = vector.broadcast %cst_49 : f32 to vector<8x32xf32>
    %128 = arith.subf %127, %126 : vector<8x32xf32>
    %129 = math.exp %128 : vector<8x32xf32>
    %cst_50 = arith.constant 1.000000e+00 : f32
    %130 = vector.broadcast %cst_50 : f32 to vector<8x32xf32>
    %131 = arith.addf %130, %129 : vector<8x32xf32>
    %132 = tpu.reciprocal %131 : vector<8x32xf32> -> vector<8x32xf32>
    %133 = vector.extract_strided_slice %118 {offsets = [0, 64], sizes = [8, 32], strides = [1, 1]} : vector<8x128xf32> to vector<8x32xf32>
    %134 = math.tanh %133 : vector<8x32xf32>
    %135 = vector.extract_strided_slice %118 {offsets = [0, 96], sizes = [8, 32], strides = [1, 1]} : vector<8x128xf32> to vector<8x32xf32>
    %cst_51 = arith.constant 0.000000e+00 : f32
    %136 = vector.broadcast %cst_51 : f32 to vector<8x32xf32>
    %137 = arith.subf %136, %135 : vector<8x32xf32>
    %138 = math.exp %137 : vector<8x32xf32>
    %cst_52 = arith.constant 1.000000e+00 : f32
    %139 = vector.broadcast %cst_52 : f32 to vector<8x32xf32>
    %140 = arith.addf %139, %138 : vector<8x32xf32>
    %141 = tpu.reciprocal %140 : vector<8x32xf32> -> vector<8x32xf32>
    %142 = arith.mulf %132, %111 : vector<8x32xf32>
    %143 = arith.mulf %125, %134 : vector<8x32xf32>
    %144 = arith.addf %142, %143 : vector<8x32xf32>
    %145 = math.tanh %144 : vector<8x32xf32>
    %146 = arith.mulf %141, %145 : vector<8x32xf32>
    %c4_i32 = arith.constant 4 : i32
    %c0_53 = arith.constant 0 : index
    %c0_54 = arith.constant 0 : index
    %147 = vector.load %arg12[%c0_53, %c0_54] : memref<8x32xf32, #tpu.memory_space<vmem>>, vector<8x32xf32>
    tpu.vector_store %arg12[%c0_53, %c0_54], %146 {strides = array<i32>} : memref<8x32xf32, #tpu.memory_space<vmem>>, vector<8x32xf32>,
    %c0_55 = arith.constant 0 : index
    %c0_56 = arith.constant 0 : index
    %148 = vector.load %arg13[%c0_55, %c0_56] : memref<8x32xf32, #tpu.memory_space<vmem>>, vector<8x32xf32>
    tpu.vector_store %arg13[%c0_55, %c0_56], %144 {strides = array<i32>} : memref<8x32xf32, #tpu.memory_space<vmem>>, vector<8x32xf32>,
    %c1_i32_57 = arith.constant 1 : i32
    %149 = arith.cmpi eq, %arg1, %c1_i32_57 : i32
    %150 = arith.extui %149 : i1 to i32
    %c0_i32_58 = arith.constant 0 : i32
    %151 = arith.cmpi ne, %150, %c0_i32_58 : i32
    scf.if %151 {
      %c3 = arith.constant 3 : index
      %c0_59 = arith.constant 0 : index
      %c0_60 = arith.constant 0 : index
      %152 = vector.load %arg2[%c3, %c0_59, %c0_60] : memref<4x8x32xf32, #tpu.memory_space<vmem>>, vector<1x8x32xf32>
      %153 = vector.shape_cast %152 : vector<1x8x32xf32> to vector<8x32xf32>
      %c0_61 = arith.constant 0 : index
      %c0_62 = arith.constant 0 : index
      %154 = vector.load %arg6[%c0_61, %c0_62] : memref<32x128xf32, #tpu.memory_space<vmem>>, vector<32x128xf32>
      %cst_63 = arith.constant dense<0.000000e+00> : vector<8x128xf32>
      %155 = tpu.matmul %153, %154, %cst_63 {dimension_numbers = #tpu.dot_dimension_numbers<[1], [0], [0], [1], [0, 0, 1, 1], [], []>} : vector<8x32xf32>, vector<32x128xf32>, vector<8x128xf32> -> vector<8x128xf32>
      %c0_64 = arith.constant 0 : index
      %c0_65 = arith.constant 0 : index
      %156 = vector.load %arg7[%c0_64, %c0_65] : memref<1x128xf32, #tpu.memory_space<vmem>>, vector<1x128xf32>
      %157 = vector.broadcast %156 : vector<1x128xf32> to vector<8x128xf32>
      %158 = arith.addf %155, %157 : vector<8x128xf32>
      %159 = vector.extract_strided_slice %158 {offsets = [0, 0], sizes = [8, 32], strides = [1, 1]} : vector<8x128xf32> to vector<8x32xf32>
      %cst_66 = arith.constant 0.000000e+00 : f32
      %160 = vector.broadcast %cst_66 : f32 to vector<8x32xf32>
      %161 = arith.subf %160, %159 : vector<8x32xf32>
      %162 = math.exp %161 : vector<8x32xf32>
      %cst_67 = arith.constant 1.000000e+00 : f32
      %163 = vector.broadcast %cst_67 : f32 to vector<8x32xf32>
      %164 = arith.addf %163, %162 : vector<8x32xf32>
      %165 = tpu.reciprocal %164 : vector<8x32xf32> -> vector<8x32xf32>
      %166 = vector.extract_strided_slice %158 {offsets = [0, 64], sizes = [8, 32], strides = [1, 1]} : vector<8x128xf32> to vector<8x32xf32>
      %167 = math.tanh %166 : vector<8x32xf32>
      %168 = vector.extract_strided_slice %158 {offsets = [0, 96], sizes = [8, 32], strides = [1, 1]} : vector<8x128xf32> to vector<8x32xf32>
      %cst_68 = arith.constant 0.000000e+00 : f32
      %169 = vector.broadcast %cst_68 : f32 to vector<8x32xf32>
      %170 = arith.subf %169, %168 : vector<8x32xf32>
      %171 = math.exp %170 : vector<8x32xf32>
      %cst_69 = arith.constant 1.000000e+00 : f32
      %172 = vector.broadcast %cst_69 : f32 to vector<8x32xf32>
      %173 = arith.addf %172, %171 : vector<8x32xf32>
      %174 = tpu.reciprocal %173 : vector<8x32xf32> -> vector<8x32xf32>
      %175 = arith.mulf %165, %167 : vector<8x32xf32>
      %176 = math.tanh %175 : vector<8x32xf32>
      %177 = arith.mulf %174, %176 : vector<8x32xf32>
      %c0_70 = arith.constant 0 : index
      %c0_71 = arith.constant 0 : index
      %178 = vector.load %arg8[%c0_70, %c0_71] : memref<32x1xf32, #tpu.memory_space<vmem>>, vector<32x1xf32>
      %cst_72 = arith.constant dense<0.000000e+00> : vector<8x1xf32>
      %179 = tpu.matmul %146, %178, %cst_72 {dimension_numbers = #tpu.dot_dimension_numbers<[1], [0], [0], [1], [0, 0, 1, 1], [], []>} : vector<8x32xf32>, vector<32x1xf32>, vector<8x1xf32> -> vector<8x1xf32>
      %c0_73 = arith.constant 0 : index
      %c0_74 = arith.constant 0 : index
      %180 = vector.load %arg9[%c0_73, %c0_74] : memref<32x1xf32, #tpu.memory_space<vmem>>, vector<32x1xf32>
      %cst_75 = arith.constant dense<0.000000e+00> : vector<8x1xf32>
      %181 = tpu.matmul %177, %180, %cst_75 {dimension_numbers = #tpu.dot_dimension_numbers<[1], [0], [0], [1], [0, 0, 1, 1], [], []>} : vector<8x32xf32>, vector<32x1xf32>, vector<8x1xf32> -> vector<8x1xf32>
      %182 = arith.addf %179, %181 : vector<8x1xf32>
      %c0_76 = arith.constant 0 : index
      %c0_77 = arith.constant 0 : index
      %183 = memref.load %arg10[%c0_76, %c0_77] : memref<1x1xf32, #tpu.memory_space<smem>>
      %184 = vector.broadcast %183 : f32 to vector<8x1xf32>
      %185 = arith.addf %182, %184 : vector<8x1xf32>
      %cst_78 = arith.constant 0.000000e+00 : f32
      %186 = vector.broadcast %cst_78 : f32 to vector<8x1xf32>
      %187 = arith.subf %186, %185 : vector<8x1xf32>
      %188 = math.exp %187 : vector<8x1xf32>
      %cst_79 = arith.constant 1.000000e+00 : f32
      %189 = vector.broadcast %cst_79 : f32 to vector<8x1xf32>
      %190 = arith.addf %189, %188 : vector<8x1xf32>
      %191 = tpu.reciprocal %190 : vector<8x1xf32> -> vector<8x1xf32>
      %c0_80 = arith.constant 0 : index
      %c0_81 = arith.constant 0 : index
      %192 = vector.load %arg11[%c0_80, %c0_81] : memref<8x1xf32, #tpu.memory_space<vmem>>, vector<8x1xf32>
      tpu.vector_store %arg11[%c0_80, %c0_81], %191 {strides = array<i32>} : memref<8x1xf32, #tpu.memory_space<vmem>>, vector<8x1xf32>,
    } else {
    }
    return
  }
  func.func @transform_0(%arg0: i32, %arg1: i32) -> (i32, i32, i32) {
    %c0_i32 = arith.constant 0 : i32
    %c0_i32_0 = arith.constant 0 : i32
    return %arg1, %arg0, %c0_i32 : i32, i32, i32
  }
  func.func @transform_1(%arg0: i32, %arg1: i32) -> (i32, i32) {
    %c0_i32 = arith.constant 0 : i32
    %c0_i32_0 = arith.constant 0 : i32
    %c0_i32_1 = arith.constant 0 : i32
    return %c0_i32, %c0_i32_0 : i32, i32
  }
  func.func @transform_2(%arg0: i32, %arg1: i32) -> (i32, i32) {
    %c0_i32 = arith.constant 0 : i32
    %c0_i32_0 = arith.constant 0 : i32
    %c0_i32_1 = arith.constant 0 : i32
    return %c0_i32, %c0_i32_0 : i32, i32
  }
  func.func @transform_3(%arg0: i32, %arg1: i32) -> (i32, i32) {
    %c0_i32 = arith.constant 0 : i32
    %c0_i32_0 = arith.constant 0 : i32
    %c0_i32_1 = arith.constant 0 : i32
    return %c0_i32, %c0_i32_0 : i32, i32
  }
  func.func @transform_4(%arg0: i32, %arg1: i32) -> (i32, i32) {
    %c0_i32 = arith.constant 0 : i32
    %c0_i32_0 = arith.constant 0 : i32
    %c0_i32_1 = arith.constant 0 : i32
    return %c0_i32, %c0_i32_0 : i32, i32
  }
  func.func @transform_5(%arg0: i32, %arg1: i32) -> (i32, i32) {
    %c0_i32 = arith.constant 0 : i32
    %c0_i32_0 = arith.constant 0 : i32
    %c0_i32_1 = arith.constant 0 : i32
    return %c0_i32, %c0_i32_0 : i32, i32
  }
  func.func @transform_6(%arg0: i32, %arg1: i32) -> (i32, i32) {
    %c0_i32 = arith.constant 0 : i32
    %c0_i32_0 = arith.constant 0 : i32
    %c0_i32_1 = arith.constant 0 : i32
    return %c0_i32, %c0_i32_0 : i32, i32
  }
  func.func @transform_7(%arg0: i32, %arg1: i32) -> (i32, i32) {
    %c0_i32 = arith.constant 0 : i32
    %c0_i32_0 = arith.constant 0 : i32
    %c0_i32_1 = arith.constant 0 : i32
    return %c0_i32, %c0_i32_0 : i32, i32
  }
  func.func @transform_8(%arg0: i32, %arg1: i32) -> (i32, i32) {
    %c0_i32 = arith.constant 0 : i32
    %c0_i32_0 = arith.constant 0 : i32
    %c0_i32_1 = arith.constant 0 : i32
    return %c0_i32, %c0_i32_0 : i32, i32
  }
  func.func @transform_9(%arg0: i32, %arg1: i32) -> (i32, i32) {
    %c0_i32 = arith.constant 0 : i32
    %c0_i32_0 = arith.constant 0 : i32
    return %arg0, %c0_i32 : i32, i32
  }
}

</mosaic_0001>

<bundles_post_ra>
// kernel: tpu_custom_call.1
= control target key start
LH: loop header
LB: loop body
LE: loop exit
PB: predicated region body
PF: predicated region fallthrough
CT: control target
= control target key end

     0   :  { %s1470_s0 = inlined_call_operand.vmem [shape: f32[8,8,32], index: 0, kind: input, shape index: {}]   ;;  %s1471_s1 = inlined_call_operand.hbm [shape: f32[32,128], index: 1, kind: input, shape index: {}]   ;;  %s1472_s2 = inlined_call_operand.hbm [shape: f32[32,128], index: 2, kind: input, shape index: {}]   ;;  %s1473_s3 = inlined_call_operand.vmem [shape: f32[1,128], index: 3, kind: input, shape index: {}]   ;;  %s1474_s4 = inlined_call_operand.hbm [shape: f32[32,128], index: 4, kind: input, shape index: {}]   ;;  %s1475_s5 = inlined_call_operand.vmem [shape: f32[1,128], index: 5, kind: input, shape index: {}]   ;;  %s1476_s6 = inlined_call_operand.vmem [shape: f32[32,1], index: 6, kind: input, shape index: {}]   ;;  %s1477_s7 = inlined_call_operand.vmem [shape: f32[32,1], index: 7, kind: input, shape index: {}]   ;;  %s1478_s8 = inlined_call_operand.<no memory space> [shape: f32[1,1], index: 8, kind: input, shape index: {}]   ;;  %s1479_s9 = inlined_call_operand.vmem [shape: f32[8,1], index: 9, kind: output, shape index: {}]  }
   0x1   :  { %14 = sst [smem:[#allocation5]] %s1478_s8 }
   0x2   :  { %15 = vsyncpa [#allocation7], 0 }
   0x3   :  { %16 = vsyncpa [#allocation9], 0  ;;  %s1317_s11 = smov 0   ;;  %s1319_s12 = smov 0  }
   0x4   :  { %s1321_s13 = smov 0  }
   0x5 LB: > { %s983_s8 = sadd.s32 4294967295, %s1250_s13   ;;  %p984_p0 = scmp.ge.s32.totalorder %s1250_s13, 1  ;;  %s1250_s13 = sphi %s1321_s13, %s22_s13   ;;  %s1246_s12 = sphi %s1319_s12, %s1484_s12   ;;  %s1242_s11 = sphi %s1317_s11, %s1483_s11  }
   0x6   : > { %p261_p1 = scmp.lt.s32.totalorder %s1250_s13, 3  ;;  %p1335_p2 = scmp.eq.s32.totalorder %s983_s8, 0 }
   0x7   : > { %s286_s17 = sshll.u32 %s1472_s2, 4  ;;  %s1252_s19 = smov [#allocation8]   ;;  %s287_s17 = int_to_ptr.hbm [resolvable:$true] %s286_s17 }
   0x8   : > { %p1342_p3 = pnand %p984_p0, %p261_p1  ;;  %s288_s20 = sshll.u32 %s1252_s19, 4  ;;  %s289_s20 = int_to_ptr.vmem [resolvable:$true] %s288_s20 }
   0x9   : > { %s31_s22 = sadd.s32 1, %s1246_s12  ;;  %s1253_s23 = smov 128  }
   0xa   : > { %p1032_p4 = pneg %p1342_p3  ;;  %p32_p6 = scmp.ge.s32.totalorder %s31_s22, 2 }
   0xb   : > { %s1254_s24 = smov 8   ;;  %s272_s27 = sshll.u32 %s1471_s1, 4  ;;  %s273_s27 = int_to_ptr.hbm [resolvable:$true] %s272_s27 }
   0xc   : > { %p1350_p5 = pnand %p1335_p2, %p1032_p4  ;;  %s1486_s22 = smov (%p32_p6, %s31_s22), 0 }
   0xd   : > { %s1255_s28 = smov [#allocation6]   ;;  %s303_s8 = sshll.u32 %s1474_s4, 4  ;;  %s304_s8 = int_to_ptr.hbm [resolvable:$true] %s303_s8 }
   0xe   : > { %1038 = dma.hbm_to_vmem [thread:$0]  (!%p1350_p5), %s287_s17, 512, %s289_s20, [#allocation9], %s1253_s23, %s1253_s23, %s1254_s24  }
   0xf   : > { %s274_s29 = sshll.u32 %s1255_s28, 4  ;;  %s1256_s15 = smov [#allocation10]   ;;  %s275_s29 = int_to_ptr.vmem [resolvable:$true] %s274_s29 }
  0x10   : > { %1035 = dma.hbm_to_vmem [thread:$0]  (!%p1350_p5), %s273_s27, 512, %s275_s29, [#allocation7], %s1253_s23, %s1253_s23, %s1254_s24  }
  0x11   : > { %s305_s16 = sshll.u32 %s1256_s15, 4  ;;  %345 = sbr.rel (%p1342_p3) target bundleno = 3030 (0xbd6), region = 56  ;;  %s306_s16 = int_to_ptr.vmem [resolvable:$true] %s305_s16 }
  0x12   : > { %1041 = dma.hbm_to_vmem [thread:$0]  (!%p1350_p5), %s304_s8, 512, %s306_s16, [#allocation9], %s1253_s23, %s1253_s23, %s1254_s24  }
  0x16   : > { %1233 = dma.done.wait (%p1335_p2), [#allocation7], 512  }
  0x17   : > { %1235 = vsyncadd (%p1335_p2), [#allocation7], 4294966784 }
  0x18   : > { %1237 = dma.done.wait (%p1335_p2), [#allocation9], 1024  }
  0x19   : > { %1239 = vsyncadd (%p1335_p2), [#allocation9], 4294966272  ;;  %s993_s17 = sshll.u32 %s1242_s11, 2  ;;  %p995_p8 = scmp.ne.s32.totalorder %s1242_s11, 0 }
  0x1a   : > { %p395_p7 = scmp.lt.s32.totalorder %s993_s17, 7 }
  0x1b   : > { %410 = sbr.rel (%p995_p8) target bundleno = 35 (0x23), region = 72 }
  0x1c   : > { %s1488_s17 = smov (!%p395_p7, %s993_s17), 7 }
  0x1d   : > { %s994_s19 = sshll.u32 %s1488_s17, 3 }
  0x1e   : > { %s1383_s21 = scalar_lea.vmem %s1470_s0, %s994_s19 }
  0x20   : > { %vm411_vm0 = vcmask 261120   ;;  %v1257_v0 = vmov 0.0  }
  0x21   : > { %412 = vst.msk [vmem:[#allocation2] sm:$0xff] %vm411_vm0, %v1257_v0 }
  0x22   : > { %413 = vst.msk [vmem:[#allocation3] sm:$0xff] %vm411_vm0, %v1257_v0 }
  0x23 PF: > { %v421_v1 = vld [vmem:[#allocation6 + $0x18] sm:$0xff]  ;;  %v420_v2 = vld [vmem:[#allocation6 + $0x10] sm:$0xff]  ;;  %v419_v5 = vld [vmem:[#allocation6 + $0x8] sm:$0xff]  ;;  %vm426_vm1 = vcmask 261120   ;;  %s1258_s24 = smov 64   ;;  %s1259_s25 = smov 32  }
  0x24   : > { %v475_v3 = vld [vmem:[#allocation8 + $0x18] sm:$0xff]  ;;  %451 = vmatpush.msra.mxu0 %v421_v1  ;;  %v474_v4 = vld [vmem:[#allocation8 + $0x10] sm:$0xff]  ;;  %v473_v6 = vld [vmem:[#allocation8 + $0x8] sm:$0xff]  ;;  %1012 = vmatpush.msra.mxu2 %v421_v1  ;;  %s1260_s26 = smov 96   ;;  %p1004_p9 = scmp.ne.s32.totalorder %s1242_s11, 1 }
  0x25   : > { %494 = vmatpush.msra.mxu1 %v475_v3  ;;  %1013 = vmatpush.msra.mxu3 %v421_v1  ;;  %v418_v7 = vld [vmem:[#allocation6] sm:$0xff]  ;;  %v414_v9 = vld [vmem:[%s1383_s21] sm:$0xff]  ;;  %v415_v42 = vld [vmem:[%s1383_s21 + $0x8] sm:$0xff]  ;;  %s1261_s11 = smov (!%p1004_p9), 64   ;;  %s1262_s29 = smov (!%p1004_p9), 96  }
  0x26   : > { %452 = vmatpush.msra.mxu0 %v420_v2  ;;  %v472_v8 = vld [vmem:[#allocation8] sm:$0xff]  ;;  %1014 = vmatpush.msra.mxu2 %v420_v2  ;;  %v1392_v11 = vld [vmem:[%s1473_s3] ss:$0 sm:$0xff]  ;;  %s1263_s28 = smov (!%p1004_p9), 32  }
  0x27   : > { %495 = vmatpush.msra.mxu1 %v474_v4  ;;  %1015 = vmatpush.msra.mxu3 %v420_v2  ;;  %v416_v39 = vld [vmem:[%s1383_s21 + $0x10] sm:$0xff] }
  0x28   : > { %453 = vmatpush.msra.mxu0 %v419_v5  ;;  %v476_v10 = vld [vmem:[#allocation2] sm:$0xff]  ;;  %1016 = vmatpush.msra.mxu2 %v419_v5 }
  0x29   : > { %496 = vmatpush.msra.mxu1 %v473_v6  ;;  %1017 = vmatpush.msra.mxu3 %v419_v5  ;;  %v477_v17 = vld [vmem:[#allocation3] sm:$0xff] }
  0x2a   : > { %454 = vmatpush.msra.mxu0 %v418_v7  ;;  %1018 = vmatpush.msra.mxu2 %v418_v7 }
  0x2b   : > { %497 = vmatpush.msra.mxu1 %v472_v8  ;;  %996 = vmatmul.msk.f32.vlgmr.msra.gmra.mxu0 %vm426_vm1, %v414_v9 }
  0x2c   : > { %1000 = vmatmul.msk.f32.vlgmr.msra.gmra.mxu1 %vm426_vm1, %v476_v10  ;;  %1019 = vmatpush.msra.mxu3 %v418_v7 }
  0x2d   : > { %562 = vmatpush.msrb.mxu2 %v475_v3  ;;  %690 = vmatpush.msrb.mxu1 %v475_v3 }
  0x2e   : > { %626 = vmatpush.msrb.mxu3 %v475_v3  ;;  %998 = vmatmul.msk.f32.vlgmr.msra.gmra.mxu2 %vm426_vm1, %v416_v39 }
  0x2f   : > { %563 = vmatpush.msrb.mxu2 %v474_v4  ;;  %691 = vmatpush.msrb.mxu1 %v474_v4 }
  0x30   : > { %627 = vmatpush.msrb.mxu3 %v474_v4 }
  0x31   : > { %564 = vmatpush.msrb.mxu2 %v473_v6  ;;  %692 = vmatpush.msrb.mxu1 %v473_v6 }
  0x32   : > { %628 = vmatpush.msrb.mxu3 %v473_v6  ;;  %v417_v6 = vld [vmem:[%s1383_s21 + $0x18] sm:$0xff] }
  0x33   : > { %565 = vmatpush.msrb.mxu2 %v472_v8  ;;  %693 = vmatpush.msrb.mxu1 %v472_v8 }
  0x34   : > { %629 = vmatpush.msrb.mxu3 %v472_v8  ;;  %997 = vmatmul.msk.f32.gmra.mxu0 %vm426_vm1, %v415_v42 }
  0x35   : > { %999 = vmatmul.msk.f32.vlgmr.msra.gmra.mxu3 %vm426_vm1, %v417_v6 }
  0xa8   : > { %v456_v12 = vpop.f32.mrf.mxu0 }
  0xa9   : > { %v499_v13 = vpop.f32.mrf.mxu1  ;;  %v457_v14 = vadd.f32 %v1392_v11, %v456_v12 }
  0xab   : > { %v502_v15 = vadd.f32 %v499_v13, %v457_v14 }
  0xad   : > { %1085 = vtanh.f32 %v502_v15  ;;  %v503_v18 = vsub.f32 0.0, %v502_v15 }
  0xaf   : > { %v504_v19 = vmul.f32 1.442695, %v503_v18 }
  0xb1   : > { %1087 = vpow2.f32 %v504_v19  ;;  %v462_v44 = vpop.f32.mrf.mxu2  ;;  %v459_v45 = vpop.f32.mrf.mxu0 }
  0xb2   : > { %v460_v46 = vadd.f32 %v1392_v11, %v459_v45  ;;  %v463_v12 = vadd.f32 %v1392_v11, %v462_v44 }
  0xb3   : > { %v1086_v16 = vpop.eup %1085 }
  0xb4   : > { %528 = vrot.lane.b32.xlu0 %v1086_v16, %s1258_s24 }
  0xb7   : > { %v1088_v20 = vpop.eup %1087 }
  0xb8   : > { %v506_v21 = vadd.f32 1.0, %v1088_v20  ;;  %v465_v10 = vpop.f32.mrf.mxu3 }
  0xb9   : > { %v466_v39 = vadd.f32 %v1392_v11, %v465_v10 }
  0xba   : > { %1089 = vrcp.f32 %v506_v21  ;;  %v518_v27 = vand.u32 2147483648, %v506_v21  ;;  %vm512_vm3 = vweird.f32 %v506_v21  ;;  %v516_v28 = vand.u32 2147483647, %v506_v21 }
  0xbc   : > { %523 = vrot.lane.b32.xlu0 %v477_v17, %s1259_s25  ;;  %v519_v30 = vor.u32 1.1754944e-38, %v518_v27  ;;  %vm517_vm5 = vcmp.eq.f32.partialorder %v516_v28, 8.507059e+37 }
  0xc0   : > { %v1090_v22 = vpop.eup %1089 }
  0xc1   : > { %v508_v23 = vmul.f32 %v1090_v22, %v506_v21  ;;  %vm513_vm2 = vweird.f32 %v1090_v22 }
  0xc2   : > { %vm514_vm4 = vmor %vm512_vm3, %vm513_vm2 }
  0xc3   : > { %v509_v24 = vsub.f32 1.0, %v508_v23 }
  0xc5   : > { %v510_v25 = vmul.f32 %v1090_v22, %v509_v24 }
  0xc7   : > { %v511_v26 = vadd.f32 %v1090_v22, %v510_v25 }
  0xc9   : > { %v515_v29 = vsel %vm514_vm4, %v1090_v22, %v511_v26 }
  0xca   : > { %v520_v32 = vsel %vm517_vm5, %v519_v30, %v515_v29 }
 0x126   : > { %v529_v31 = vpop.permute.xlu0 %528 }
 0x127   : > { %v531_v33 = vmul.f32 %v529_v31, %v520_v32 }
 0x129   : > { %533 = vrot.lane.b32.xlu1 %v531_v33, %s1259_s25 }
 0x12e   : > { %v524_v34 = vpop.permute.xlu0 %523 }
 0x12f   : > { %v526_v35 = vmul.f32 %v524_v34, %v520_v32 }
 0x19b   : > { %v534_v36 = vpop.permute.xlu1 %533 }
 0x19c   : > { %v536_v37 = vadd.f32 %v534_v36, %v526_v35 }
 0x19e   : > { %1091 = vtanh.f32 %v536_v37 }
 0x1a4   : > { %v1092_v38 = vpop.eup %1091 }
 0x1a5   : > { %539 = vrot.lane.b32.xlu1 %v1092_v38, %s1258_s24 }
 0x217   : > { %v540_v40 = vpop.permute.xlu1 %539 }
 0x218   : > { %v542_v41 = vmul.f32 %v540_v40, %v520_v32 }
 0x21a   : > { %546 = vrot.lane.b32.xlu2 %v542_v41, %s1259_s25 }
 0x274   : > { %v547_v43 = vpop.permute.xlu2 %546 }
 0x275   : > { %1001 = vmatmul.msk.f32.vlgmr.msrb.gmra.mxu2 %vm426_vm1, %v547_v43 }
 0x2f8   : > { %v567_v47 = vpop.f32.mrf.mxu2 }
 0x2f9   : > { %v570_v48 = vadd.f32 %v567_v47, %v460_v46 }
 0x2fb   : > { %1093 = vtanh.f32 %v570_v48  ;;  %v571_v50 = vsub.f32 0.0, %v570_v48 }
 0x2fd   : > { %v572_v51 = vmul.f32 1.442695, %v571_v50 }
 0x2ff   : > { %1095 = vpow2.f32 %v572_v51 }
 0x301   : > { %v1094_v49 = vpop.eup %1093 }
 0x302   : > { %592 = vrot.lane.b32.xlu2 %v1094_v49, %s1258_s24 }
 0x305   : > { %v1096_v52 = vpop.eup %1095 }
 0x306   : > { %v574_v53 = vadd.f32 1.0, %v1096_v52 }
 0x308   : > { %1097 = vrcp.f32 %v574_v53  ;;  %v586_v59 = vand.u32 2147483648, %v574_v53  ;;  %vm580_vm7 = vweird.f32 %v574_v53  ;;  %v584_v60 = vand.u32 2147483647, %v574_v53 }
 0x30a   : > { %v587_v62 = vor.u32 1.1754944e-38, %v586_v59  ;;  %vm585_vm9 = vcmp.eq.f32.partialorder %v584_v60, 8.507059e+37 }
 0x30e   : > { %v1098_v54 = vpop.eup %1097 }
 0x30f   : > { %v576_v55 = vmul.f32 %v1098_v54, %v574_v53  ;;  %vm581_vm6 = vweird.f32 %v1098_v54 }
 0x310   : > { %vm582_vm8 = vmor %vm580_vm7, %vm581_vm6 }
 0x311   : > { %v577_v56 = vsub.f32 1.0, %v576_v55 }
 0x313   : > { %v578_v57 = vmul.f32 %v1098_v54, %v577_v56 }
 0x315   : > { %v579_v58 = vadd.f32 %v1098_v54, %v578_v57 }
 0x317   : > { %v583_v61 = vsel %vm582_vm8, %v1098_v54, %v579_v58 }
 0x318   : > { %v588_v0 = vsel %vm585_vm9, %v587_v62, %v583_v61 }
 0x319   : > { %v590_v2 = vmul.f32 %v588_v0, %v536_v37 }
 0x35c   : > { %v593_v63 = vpop.permute.xlu2 %592 }
 0x35d   : > { %v595_v1 = vmul.f32 %v593_v63, %v588_v0 }
 0x35f   : > { %597 = vrot.lane.b32.xlu0 %v595_v1, %s1259_s25 }
 0x3d1   : > { %v598_v3 = vpop.permute.xlu0 %597 }
 0x3d2   : > { %v600_v4 = vadd.f32 %v598_v3, %v590_v2 }
 0x3d4   : > { %1099 = vtanh.f32 %v600_v4 }
 0x3da   : > { %v1100_v5 = vpop.eup %1099 }
 0x3db   : > { %603 = vrot.lane.b32.xlu1 %v1100_v5, %s1258_s24 }
 0x44d   : > { %v604_v7 = vpop.permute.xlu1 %603 }
 0x44e   : > { %v606_v8 = vmul.f32 %v604_v7, %v588_v0 }
 0x450   : > { %610 = vrot.lane.b32.xlu2 %v606_v8, %s1259_s25 }
 0x4aa   : > { %v611_v9 = vpop.permute.xlu2 %610 }
 0x4ab   : > { %1002 = vmatmul.msk.f32.vlgmr.msrb.gmra.mxu3 %vm426_vm1, %v611_v9 }
 0x52e   : > { %v631_v13 = vpop.f32.mrf.mxu3 }
 0x52f   : > { %v634_v14 = vadd.f32 %v631_v13, %v463_v12 }
 0x531   : > { %1101 = vtanh.f32 %v634_v14  ;;  %v635_v16 = vsub.f32 0.0, %v634_v14 }
 0x533   : > { %v636_v17 = vmul.f32 1.442695, %v635_v16 }
 0x535   : > { %1103 = vpow2.f32 %v636_v17 }
 0x537   : > { %v1102_v15 = vpop.eup %1101 }
 0x538   : > { %656 = vrot.lane.b32.xlu0 %v1102_v15, %s1258_s24 }
 0x53b   : > { %v1104_v18 = vpop.eup %1103 }
 0x53c   : > { %v638_v19 = vadd.f32 1.0, %v1104_v18 }
 0x53e   : > { %1105 = vrcp.f32 %v638_v19  ;;  %v650_v25 = vand.u32 2147483648, %v638_v19  ;;  %vm644_vm11 = vweird.f32 %v638_v19  ;;  %v648_v26 = vand.u32 2147483647, %v638_v19 }
 0x540   : > { %v651_v28 = vor.u32 1.1754944e-38, %v650_v25  ;;  %vm649_vm13 = vcmp.eq.f32.partialorder %v648_v26, 8.507059e+37 }
 0x544   : > { %v1106_v20 = vpop.eup %1105 }
 0x545   : > { %v640_v21 = vmul.f32 %v1106_v20, %v638_v19  ;;  %vm645_vm10 = vweird.f32 %v1106_v20 }
 0x546   : > { %vm646_vm12 = vmor %vm644_vm11, %vm645_vm10 }
 0x547   : > { %v641_v22 = vsub.f32 1.0, %v640_v21 }
 0x549   : > { %v642_v23 = vmul.f32 %v1106_v20, %v641_v22 }
 0x54b   : > { %v643_v24 = vadd.f32 %v1106_v20, %v642_v23 }
 0x54d   : > { %v647_v27 = vsel %vm646_vm12, %v1106_v20, %v643_v24 }
 0x54e   : > { %v652_v30 = vsel %vm649_vm13, %v651_v28, %v647_v27 }
 0x54f   : > { %v654_v32 = vmul.f32 %v652_v30, %v600_v4 }
 0x5aa   : > { %v657_v29 = vpop.permute.xlu0 %656 }
 0x5ab   : > { %v659_v31 = vmul.f32 %v657_v29, %v652_v30 }
 0x5ad   : > { %661 = vrot.lane.b32.xlu1 %v659_v31, %s1259_s25 }
 0x61f   : > { %v662_v33 = vpop.permute.xlu1 %661 }
 0x620   : > { %v664_v34 = vadd.f32 %v662_v33, %v654_v32 }
 0x622   : > { %1107 = vtanh.f32 %v664_v34 }
 0x628   : > { %v1108_v35 = vpop.eup %1107 }
 0x629   : > { %667 = vrot.lane.b32.xlu2 %v1108_v35, %s1258_s24 }
 0x683   : > { %v668_v36 = vpop.permute.xlu2 %667 }
 0x684   : > { %v670_v37 = vmul.f32 %v668_v36, %v652_v30 }
 0x686   : > { %674 = vrot.lane.b32.xlu0 %v670_v37, %s1259_s25 }
 0x6f8   : > { %v675_v38 = vpop.permute.xlu0 %674 }
 0x6f9   : > { %1003 = vmatmul.msk.f32.vlgmr.msrb.gmra.mxu1 %vm426_vm1, %v675_v38 }
 0x776   : > { %v695_v40 = vpop.f32.mrf.mxu1 }
 0x777   : > { %v698_v41 = vadd.f32 %v695_v40, %v466_v39 }
 0x779   : > { %1109 = vtanh.f32 %v698_v41  ;;  %v699_v43 = vsub.f32 0.0, %v698_v41 }
 0x77b   : > { %v700_v44 = vmul.f32 1.442695, %v699_v43 }
 0x77d   : > { %1111 = vpow2.f32 %v700_v44 }
 0x77f   : > { %v1110_v42 = vpop.eup %1109 }
 0x780   : > { %720 = vrot.lane.b32.xlu1 %v1110_v42, %s1258_s24 }
 0x783   : > { %v1112_v45 = vpop.eup %1111 }
 0x784   : > { %v702_v46 = vadd.f32 1.0, %v1112_v45 }
 0x786   : > { %1113 = vrcp.f32 %v702_v46  ;;  %v714_v52 = vand.u32 2147483648, %v702_v46  ;;  %vm708_vm15 = vweird.f32 %v702_v46  ;;  %v712_v11 = vand.u32 2147483647, %v702_v46 }
 0x788   : > { %v715_v54 = vor.u32 1.1754944e-38, %v714_v52  ;;  %vm713_vm2 = vcmp.eq.f32.partialorder %v712_v11, 8.507059e+37 }
 0x78c   : > { %v1114_v47 = vpop.eup %1113 }
 0x78d   : > { %v704_v48 = vmul.f32 %v1114_v47, %v702_v46  ;;  %vm709_vm14 = vweird.f32 %v1114_v47 }
 0x78e   : > { %vm710_vm0 = vmor %vm708_vm15, %vm709_vm14 }
 0x78f   : > { %v705_v49 = vsub.f32 1.0, %v704_v48 }
 0x791   : > { %v706_v50 = vmul.f32 %v1114_v47, %v705_v49 }
 0x793   : > { %v707_v51 = vadd.f32 %v1114_v47, %v706_v50 }
 0x795   : > { %v711_v53 = vsel %vm710_vm0, %v1114_v47, %v707_v51 }
 0x796   : > { %v716_v56 = vsel %vm713_vm2, %v715_v54, %v711_v53 }
 0x797   : > { %v718_v58 = vmul.f32 %v716_v56, %v664_v34 }
 0x7f2   : > { %v721_v55 = vpop.permute.xlu1 %720 }
 0x7f3   : > { %v723_v57 = vmul.f32 %v721_v55, %v716_v56 }
 0x7f5   : > { %725 = vrot.lane.b32.xlu2 %v723_v57, %s1259_s25 }
 0x84f   : > { %v726_v59 = vpop.permute.xlu2 %725 }
 0x850   : > { %v728_v60 = vadd.f32 %v726_v59, %v718_v58 }
 0x852   : > { %1115 = vtanh.f32 %v728_v60  ;;  %741 = vrot.lane.b32.xlu2 %v728_v60, %s1260_s26 }
 0x858   : > { %v1116_v61 = vpop.eup %1115 }
 0x859   : > { %731 = vrot.lane.b32.xlu0 %v1116_v61, %s1258_s24 }
 0x8ac   : > { %v742_v62 = vpop.permute.xlu2 %741 }
 0x8ad   : > { %744 = vst.msk [vmem:[#allocation3] sm:$0xff] %vm426_vm1, %v742_v62 }
 0x8cb   : > { %v732_v63 = vpop.permute.xlu0 %731 }
 0x8cc   : > { %v734_v0 = vmul.f32 %v732_v63, %v716_v56 }
 0x8ce   : > { %736 = vrot.lane.b32.xlu1 %v734_v0, %s1259_s25 }
 0x93d   : > { %748 = sbr.rel (%p1004_p9) target bundleno = 3030 (0xbd6), region = 76 }
 0x940   : > { %v737_v1 = vpop.permute.xlu1 %736 }
 0x941   : > { %739 = vst.msk [vmem:[#allocation2] sm:$0xff] %vm426_vm1, %v737_v1 }
 0x942   : > { %v754_v2 = vld [vmem:[#allocation10 + $0x18] sm:$0xff]  ;;  %v753_v3 = vld [vmem:[#allocation10 + $0x10] sm:$0xff]  ;;  %v752_v4 = vld [vmem:[#allocation10 + $0x8] sm:$0xff]  ;;  %vm888_vm9 = vcmask 7168  }
 0x943   : > { %774 = vmatpush.msra.mxu0 %v754_v2  ;;  %v751_v5 = vld [vmem:[#allocation10] sm:$0xff]  ;;  %v1005_v6 = vld [vmem:[%s1383_s21 + $0x18] sm:$0xff]  ;;  %v1117_v7 = vld [vmem:[%s1475_s5] ss:$0 sm:$0xff] }
 0x944   : > { %v815_v29 = vld [vmem:[%s1476_s6 + $0x18] sm:$0xff]  ;;  %v814_v30 = vld [vmem:[%s1476_s6 + $0x10] sm:$0xff]  ;;  %v813_v33 = vld [vmem:[%s1476_s6 + $0x8] sm:$0xff] }
 0x945   : > { %775 = vmatpush.msra.mxu0 %v753_v3  ;;  %859 = vmatpush.msra.mxu2 %v815_v29  ;;  %v819_v31 = vld [vmem:[%s1477_s7 + $0x18] sm:$0xff]  ;;  %v818_v32 = vld [vmem:[%s1477_s7 + $0x10] sm:$0xff]  ;;  %v817_v34 = vld [vmem:[%s1477_s7 + $0x8] sm:$0xff] }
 0x946   : > { %837 = vmatpush.msra.mxu1 %v819_v31  ;;  %v812_v35 = vld [vmem:[%s1476_s6] sm:$0xff] }
 0x947   : > { %776 = vmatpush.msra.mxu0 %v752_v4  ;;  %860 = vmatpush.msra.mxu2 %v814_v30  ;;  %v816_v36 = vld [vmem:[%s1477_s7] sm:$0xff] }
 0x948   : > { %838 = vmatpush.msra.mxu1 %v818_v32 }
 0x949   : > { %777 = vmatpush.msra.mxu0 %v751_v5  ;;  %861 = vmatpush.msra.mxu2 %v813_v33 }
 0x94a   : > { %1006 = vmatmul.msk.f32.vlgmr.msra.gmra.mxu0 %vm426_vm1, %v1005_v6  ;;  %839 = vmatpush.msra.mxu1 %v817_v34 }
 0x94b   : > { %862 = vmatpush.msra.mxu2 %v812_v35 }
 0x94c   : > { %1008 = vmatmul.msk.f32.vlgmr.msra.gmra.mxu2 %vm426_vm1, %v737_v1  ;;  %840 = vmatpush.msra.mxu1 %v816_v36 }
 0x9c7   : > { %v779_v8 = vpop.f32.mrf.mxu0 }
 0x9c8   : > { %v780_v9 = vadd.f32 %v1117_v7, %v779_v8 }
 0x9ca   : > { %1118 = vtanh.f32 %v780_v9  ;;  %v782_v12 = vsub.f32 0.0, %v780_v9 }
 0x9cc   : > { %v783_v13 = vmul.f32 1.442695, %v782_v12 }
 0x9ce   : > { %1120 = vpow2.f32 %v783_v13 }
 0x9cf   : > { %v864_v40 = vpop.f32.mrf.mxu2 }
 0x9d0   : > { %v1119_v10 = vpop.eup %1118 }
 0x9d1   : > { %802 = vrot.lane.b32.xlu0 %v1119_v10, %s1261_s11  ;;  %s867_s11 = sld [smem:[#allocation5]] }
 0x9d4   : > { %v1121_v14 = vpop.eup %1120 }
 0x9d5   : > { %v785_v15 = vadd.f32 1.0, %v1121_v14 }
 0x9d7   : > { %1122 = vrcp.f32 %v785_v15  ;;  %v797_v21 = vand.u32 2147483648, %v785_v15  ;;  %vm791_vm4 = vweird.f32 %v785_v15  ;;  %v795_v22 = vand.u32 2147483647, %v785_v15 }
 0x9d8   : > { %v868_v42 = vstv %s867_s11 }
 0x9d9   : > { %v798_v24 = vor.u32 1.1754944e-38, %v797_v21  ;;  %vm796_vm6 = vcmp.eq.f32.partialorder %v795_v22, 8.507059e+37 }
 0x9dd   : > { %v1123_v16 = vpop.eup %1122 }
 0x9de   : > { %v787_v17 = vmul.f32 %v1123_v16, %v785_v15  ;;  %vm792_vm3 = vweird.f32 %v1123_v16 }
 0x9df   : > { %vm793_vm5 = vmor %vm791_vm4, %vm792_vm3 }
 0x9e0   : > { %v788_v18 = vsub.f32 1.0, %v787_v17 }
 0x9e2   : > { %v789_v19 = vmul.f32 %v1123_v16, %v788_v18 }
 0x9e4   : > { %v790_v20 = vadd.f32 %v1123_v16, %v789_v19 }
 0x9e6   : > { %v794_v23 = vsel %vm793_vm5, %v1123_v16, %v790_v20 }
 0x9e7   : > { %v799_v26 = vsel %vm796_vm6, %v798_v24, %v794_v23 }
 0xa43   : > { %v803_v25 = vpop.permute.xlu0 %802 }
 0xa44   : > { %v805_v27 = vmul.f32 %v803_v25, %v799_v26 }
 0xa46   : > { %1124 = vtanh.f32 %v805_v27 }
 0xa4c   : > { %v1125_v28 = vpop.eup %1124 }
 0xa4d   : > { %808 = vrot.lane.b32.xlu0 %v1125_v28, %s1262_s29 }
 0xabf   : > { %v809_v37 = vpop.permute.xlu0 %808 }
 0xac0   : > { %v811_v38 = vmul.f32 %v809_v37, %v799_v26 }
 0xac2   : > { %821 = vrot.lane.b32.xlu1 %v811_v38, %s1263_s28 }
 0xb34   : > { %v822_v39 = vpop.permute.xlu1 %821 }
 0xb35   : > { %1007 = vmatmul.msk.f32.vlgmr.msra.gmra.mxu1 %vm426_vm1, %v822_v39 }
 0xbb2   : > { %v842_v41 = vpop.f32.mrf.mxu1 }
 0xbb3   : > { %v865_v43 = vadd.f32 %v864_v40, %v842_v41 }
 0xbb5   : > { %v869_v44 = vadd.f32 %v868_v42, %v865_v43 }
 0xbb7   : > { %v870_v45 = vsub.f32 0.0, %v869_v44 }
 0xbb9   : > { %v871_v46 = vmul.f32 1.442695, %v870_v45 }
 0xbbb   : > { %1126 = vpow2.f32 %v871_v46 }
 0xbc1   : > { %v1127_v47 = vpop.eup %1126 }
 0xbc2   : > { %v873_v48 = vadd.f32 1.0, %v1127_v47 }
 0xbc4   : > { %1128 = vrcp.f32 %v873_v48  ;;  %v885_v52 = vand.u32 2147483648, %v873_v48  ;;  %v883_v53 = vand.u32 2147483647, %v873_v48  ;;  %vm879_vm1 = vweird.f32 %v873_v48 }
 0xbc6   : > { %v886_v55 = vor.u32 1.1754944e-38, %v885_v52  ;;  %vm884_vm10 = vcmp.eq.f32.partialorder %v883_v53, 8.507059e+37 }
 0xbca   : > { %v1129_v49 = vpop.eup %1128 }
 0xbcb   : > { %v875_v50 = vmul.f32 %v1129_v49, %v873_v48  ;;  %vm880_vm7 = vweird.f32 %v1129_v49 }
 0xbcc   : > { %vm881_vm8 = vmor %vm879_vm1, %vm880_vm7 }
 0xbcd   : > { %v876_v51 = vsub.f32 1.0, %v875_v50 }
 0xbcf   : > { %v877_v11 = vmul.f32 %v1129_v49, %v876_v51 }
 0xbd1   : > { %v878_v54 = vadd.f32 %v1129_v49, %v877_v11 }
 0xbd3   : > { %v882_v56 = vsel %vm881_vm8, %v1129_v49, %v878_v54 }
 0xbd4   : > { %v887_v57 = vsel %vm884_vm10, %v886_v55, %v882_v56 }
 0xbd5   : > { %889 = vst.msk [vmem:[%s1479_s9] sm:$0xff] %vm888_vm9, %v887_v57 }
 0xbd6 PF: > { %s22_s13 = sadd.s32 1, %s1250_s13   ;;  %s1483_s11 = smov %s1246_s12 }
 0xbd7   : > { %p19_p10 = scmp.ge.s32.totalorder %s22_s13, 4   ;;  %s1484_s12 = smov %s1486_s22 }
 0xbd9   :  { %21 = sbr.rel (!%p19_p10) target bundleno = 5 (0x5), region = 111 }
 0xbde   :  { %909 = vsyncpa [#allocation7], 1 }
 0xbdf   :  { %911 = vsyncpa [#allocation7 + $0x1], 1 }
 0xbe0   :  { %912 = vsyncpa [#allocation9], 1 }

</bundles_post_ra>
